<compile_context>
chip_gen: v6e
topology: v6e:2x2x1
jax: 0.10.0
libtpu: 0.0.40
codegen_flags: <defaults>
</compile_context>

<pallas_src>
import functools

import jax
import jax.numpy as jnp
from jax.experimental import pallas as pl
from jax.experimental.pallas import tpu as pltpu


def _round_up(x, m):
    return ((x + m - 1) // m) * m


def _cdiv(a, b):
    return -(-a // b)


# --------------------------------------------------------------------------- #
# Kernel 1: row-wise L2 normalization + the module's clamp, computed once.    #
# --------------------------------------------------------------------------- #
def _l2_normalize_kernel(x_ref, o_ref):
    x = x_ref[...].astype(jnp.float32)
    # F.normalize(dim=1, eps=1e-12): x / max(||x||, 1e-12) == x * rsqrt(max(ss, 1e-24))
    inv_norm = jax.lax.rsqrt(
        jnp.maximum(jnp.sum(x * x, axis=1, keepdims=True), 1e-24))
    xn = jnp.clip(x * inv_norm, -1000.0, 1000.0)   # torch.clamp in the module
    o_ref[...] = xn.astype(o_ref.dtype)


def _l2_normalize(x, out_dtype, vmem_limit):
    n_pad, d_pad = x.shape
    # Keep (r, d_pad) f32-in + bf16-out, double-buffered, under ~1/3 of the
    # budget (guards v5e's 16 MiB scoped default when d is very large).
    budget = (vmem_limit if vmem_limit else (16 << 20)) // 3
    r = min(n_pad, 128)
    while r > 8 and r * d_pad * 12 > budget:
        r //= 2
    cp = dict(dimension_semantics=("parallel",))
    if vmem_limit is not None:
        cp["vmem_limit_bytes"] = int(vmem_limit)
    return pl.pallas_call(
        _l2_normalize_kernel,
        out_shape=jax.ShapeDtypeStruct((n_pad, d_pad), out_dtype),
        grid_spec=pltpu.PrefetchScalarGridSpec(
            num_scalar_prefetch=0,
            grid=(_cdiv(n_pad, r),),
            in_specs=[pl.BlockSpec((r, d_pad), lambda i: (i, 0))],
            out_specs=pl.BlockSpec((r, d_pad), lambda i: (i, 0)),
        ),
        compiler_params=pltpu.CompilerParams(**cp),
    )(x)


# --------------------------------------------------------------------------- #
# Kernel 2: InfoNCE over a (row-chunk, key-tile) grid, online masked softmax. #
# --------------------------------------------------------------------------- #
def _infonce_kernel(*refs, n_real, inv_temp, supervised, cs_sub):
    if supervised:
        (lab_q_ref, lab_k_ref, q_ref, kt_ref,
         loss_ref, cnt_ref,
         m_ref, l_ref, s_self_ref, s_lab_ref, c_lab_ref) = refs
    else:
        (q_ref, kt_ref, loss_ref, cnt_ref,
         m_ref, l_ref, s_self_ref) = refs
        lab_q_ref = lab_k_ref = s_lab_ref = c_lab_ref = None

    r = pl.program_id(0)
    c = pl.program_id(1)
    nc = pl.num_programs(1)
    C = q_ref.shape[0]
    T = kt_ref.shape[1]

    @pl.when(c == 0)
    def _init():
        m_ref[...] = jnp.full(m_ref.shape, -jnp.inf, dtype=jnp.float32)
        l_ref[...] = jnp.zeros_like(l_ref)
        s_self_ref[...] = jnp.zeros_like(s_self_ref)
        if supervised:
            s_lab_ref[...] = jnp.zeros_like(s_lab_ref)
            c_lab_ref[...] = jnp.zeros_like(c_lab_ref)

    # Similarity tile on the MXU: (C, D) bf16 @ (D, T) bf16 -> f32.
    # Keys were pre-transposed once in the wrapper (no per-step layout change).
    sim = jax.lax.dot_general(q_ref[...], kt_ref[...],
                              (((1,), (0,)), ((), ())),
                              preferred_element_type=jnp.float32)   # (C, T)
    sim = sim * inv_temp   # kept in f32 to match the module's matmul-then-scale

    row0 = r * C
    col0 = c * T
    diag_in_tile = jnp.logical_and(col0 < row0 + C, row0 < col0 + T)
    has_pad_cols = (col0 + T) > n_real
    needs_mask = jnp.logical_or(diag_in_tile, has_pad_cols)

    def _accumulate(sim_for_max, valid_mask, pos_mask):
        m_prev = m_ref[...]
        m_new = jnp.maximum(m_prev,
                            jnp.max(sim_for_max, axis=1, keepdims=True))
        p = jnp.maximum(jnp.exp(sim - m_new), 1e-8)    # torch clamp(exp, 1e-8)
        if valid_mask is not None:
            p = jnp.where(valid_mask, p, 0.0)
            s_self_ref[...] += jnp.sum(jnp.where(valid_mask, sim, 0.0),
                                       axis=1, keepdims=True)
        else:
            s_self_ref[...] += jnp.sum(sim, axis=1, keepdims=True)
        alpha = jnp.exp(m_prev - m_new)
        l_ref[...] = alpha * l_ref[...] + jnp.sum(p, axis=1, keepdims=True)
        m_ref[...] = m_new
        if supervised:
            s_lab_ref[...] += jnp.sum(jnp.where(pos_mask, sim, 0.0),
                                      axis=1, keepdims=True)
            c_lab_ref[...] += jnp.sum(pos_mask.astype(jnp.float32),
                                      axis=1, keepdims=True)

    @pl.when(needs_mask)
    def _masked_tile():
        # Only tiles touching the self-diagonal or the padded key tail pay the
        # (C, T) masking passes.
        row_gid = row0 + jax.lax.broadcasted_iota(jnp.int32, (C, 1), 0)
        col_gid = col0 + jax.lax.broadcasted_iota(jnp.int32, (1, T), 1)
        col_ok = col_gid < n_real                               # (1, T)
        valid = jnp.logical_and(row_gid != col_gid, col_ok)     # (C, T)
        # torch's max is over all *real* columns (self included); only the
        # zero-padded tail columns are excluded from it.
        sim_for_max = jnp.where(col_ok, sim, -1e30)
        pos = None
        if supervised:
            pos = jnp.logical_and(lab_q_ref[...] == lab_k_ref[...], valid)
        _accumulate(sim_for_max, valid, pos)

    @pl.when(jnp.logical_not(needs_mask))
    def _fast_tile():
        pos = None
        if supervised:
            # No diagonal / padded columns in this tile (sentinel labels on the
            # padded rows never match real labels), so no extra masking needed.
            pos = lab_q_ref[...] == lab_k_ref[...]
        _accumulate(sim, None, pos)

    @pl.when(c == nc - 1)
    def _finalize():
        # NOTE: the fused row loss pos*(m + lse) - sum_pos(sim) drops the
        # module's clamp(sim - max, -1000) / clamp(log_prob, -1000); those only
        # activate for temperature < ~0.002 with L2-normalized features.
        lse = jnp.log(l_ref[...] + 1e-8)                        # (C, 1)
        m = m_ref[...]
        row_gid = row0 + jax.lax.broadcasted_iota(jnp.int32, (C, 1), 0)
        row_valid = row_gid < n_real                            # (C, 1)
        npos_self = jnp.float32(n_real - 1)
        if supervised:
            cnt = c_lab_ref[...]
            slab = s_lab_ref[...]
            sself = s_self_ref[...]
            loss_sum = jnp.zeros((1, 1), jnp.float32)
            valid_sum = jnp.zeros((1, 1), jnp.float32)
            # has_pos fallback is evaluated per *semantic* chunk (torch
            # semantics); several semantic chunks may share this row block.
            for j in range(C // cs_sub):
                a, b = j * cs_sub, (j + 1) * cs_sub
                cnt_j = cnt[a:b]
                has_pos = jnp.sum(cnt_j, axis=0, keepdims=True) > 0.0   # (1,1)
                pos_j = jnp.where(has_pos, cnt_j, npos_self)
                s_pos_j = jnp.where(has_pos, slab[a:b], sself[a:b])
                rl = pos_j * (m[a:b] + lse[a:b]) - s_pos_j
                ok = jnp.logical_and(pos_j > 0.0, row_valid[a:b])
                rl = jnp.where(ok, rl / jnp.maximum(pos_j, 1.0), 0.0)
                loss_sum = loss_sum + jnp.sum(rl, axis=0, keepdims=True)
                valid_sum = valid_sum + jnp.sum(ok.astype(jnp.float32),
                                                axis=0, keepdims=True)
        else:
            rl = npos_self * (m + lse) - s_self_ref[...]
            if n_real > 1:
                ok = row_valid
            else:
                ok = jnp.zeros_like(row_valid)
            rl = jnp.where(ok, rl / jnp.maximum(npos_self, 1.0), 0.0)
            loss_sum = jnp.sum(rl, axis=0, keepdims=True)
            valid_sum = jnp.sum(ok.astype(jnp.float32), axis=0, keepdims=True)
        loss_ref[...] = jnp.broadcast_to(loss_sum.reshape(1, 1, 1),
                                         loss_ref.shape)
        cnt_ref[...] = jnp.broadcast_to(valid_sum.reshape(1, 1, 1),
                                        cnt_ref.shape)


# --------------------------------------------------------------------------- #
# Tiling plan (generation aware)                                              #
# --------------------------------------------------------------------------- #
def _vmem_plan():
    try:
        cap = int(pltpu.get_tpu_info().vmem_capacity_bytes)
    except Exception:
        cap = 64 << 20                         # conservative (v7x-class) fallback
    if cap >= (96 << 20):                      # v5e / v6e: 128 MiB physical VMEM
        limit = min(cap * 3 // 4, 100 << 20)
        target_rows = 1024
    else:                                      # v7x-class: 64 MiB per TensorCore
        limit = min(cap * 3 // 4, 48 << 20)
        target_rows = 512
    budget = (limit * 17) // 20                # headroom for compiler temporaries
    return limit, budget, target_rows


def _vmem_estimate(c_rows, t_cols, d_pad, supervised):
    q = 2 * c_rows * d_pad * 2                          # bf16 query block x2 bufs
    k = 2 * d_pad * t_cols * 2                          # bf16 key tile   x2 bufs
    tmp = (6 if supervised else 5) * c_rows * t_cols * 4   # f32 (C,T) temporaries
    scr = (5 if supervised else 3) * c_rows * 128 * 4       # lane-padded (C,1) f32
    lab = (2 * (c_rows * 128 * 4 + 8 * t_cols * 4)) if supervised else 0
    out = 4 * 8 * 128 * 4
    return q + k + tmp + scr + lab + out


def _plan_tiles(n, d_pad, chunk_size, supervised, budget, target_rows):
    cands = []                       # (c_rows, cs_sub) candidates, descending
    if supervised:
        cs = int(chunk_size)
        if cs >= n or cs % 8 != 0:
            # One semantic chunk per row block (block-level has_pos fallback).
            # TODO(synk): when 0 < chunk_size < n and chunk_size % 8 != 0 the
            # fallback-chunk boundaries shift slightly vs torch.
            cr = _round_up(min(cs, n), 8)
            cands.append((cr, cr))
        else:
            n_sem = _cdiv(n, cs)
            k_cap = max(1, _cdiv(n_sem, 2))              # keep >= 2 row blocks
            k = max(1, min(max(1, target_rows // cs), k_cap, 16))
            while True:
                cands.append((k * cs, cs))
                if k == 1:
                    break
                k = max(1, k // 2)
    else:
        cr = min(_round_up(n, 8), target_rows)
        if cr >= n and n > 8:                            # >= 2 row blocks (megacore)
            cr = _round_up(_cdiv(n, 2), 8)
        c = cr
        while True:
            cands.append((c, c))
            if c <= 8:
                break
            c = max(8, _round_up(c // 2, 8))
    # Column tile: whole key matrix first (VMEM-resident, DMA'd once), else
    # stream in wide 128-multiple tiles.
    resident = _round_up(n, 128)
    col_cands = [resident] + [t for t in (1024, 512, 256, 128) if t < resident]
    for c_rows, cs_sub in cands:
        for t_cols in col_cands:
            if _vmem_estimate(c_rows, t_cols, d_pad, supervised) <= budget:
                return c_rows, cs_sub, t_cols
    c_rows, cs_sub = cands[-1]
    return c_rows, cs_sub, 128


# --------------------------------------------------------------------------- #
# Wrapper                                                                      #
# --------------------------------------------------------------------------- #
def infonce_loss_pallas(features, labels=None, *, temperature=0.07,
                        reduction='mean', chunk_size=256,
                        mxu_dtype=jnp.bfloat16):
    """InfoNCELoss.forward(features, labels) as Pallas TPU kernels."""
    n, d = features.shape
    supervised = labels is not None
    inv_temp = 1.0 / max(float(temperature), 1e-4)

    d_pad = _round_up(d, 128)
    vmem_limit, budget, target_rows = _vmem_plan()
    c_rows, cs_sub, t_cols = _plan_tiles(n, d_pad, chunk_size, supervised,
                                         budget, target_rows)

    nr = _cdiv(n, c_rows)
    nc = _cdiv(n, t_cols)
    n_pad = max(nr * c_rows, nc * t_cols)

    # Pad once in the wrapper: zero rows/cols do not change norms/similarities
    # and remove all per-step tail-zeroing passes from the hot loop.
    x = features
    if n_pad != n or d_pad != d:
        x = jnp.pad(x, ((0, n_pad - n), (0, d_pad - d)))

    feats_n = _l2_normalize(x, mxu_dtype, vmem_limit)     # (n_pad, d_pad) bf16
    keys_t = feats_n.T                                    # (d_pad, n_pad): one-time
                                                          # copy, natural MXU RHS.

    kernel = functools.partial(_infonce_kernel, n_real=n, inv_temp=inv_temp,
                               supervised=supervised, cs_sub=cs_sub)

    in_specs = []
    args = []
    if supervised:
        lab = jnp.asarray(labels).astype(jnp.int32)
        if n_pad != n:
            # Sentinel never matches a real label (padded rows / columns).
            sentinel = jnp.full((n_pad - n,), jnp.iinfo(jnp.int32).min,
                                dtype=jnp.int32)
            lab = jnp.concatenate([lab, sentinel])
        in_specs += [pl.BlockSpec((c_rows, 1), lambda r, c: (r, 0)),
                     pl.BlockSpec((1, t_cols), lambda r, c: (0, c))]
        args += [lab.reshape(n_pad, 1), lab.reshape(1, n_pad)]
    in_specs += [pl.BlockSpec((c_rows, d_pad), lambda r, c: (r, 0)),
                 pl.BlockSpec((d_pad, t_cols), lambda r, c: (0, c))]
    args += [feats_n, keys_t]

    scratch = [pltpu.VMEM((c_rows, 1), jnp.float32)] * (5 if supervised else 3)

    cp = dict(dimension_semantics=("parallel", "arbitrary"))
    if vmem_limit is not None:
        cp["vmem_limit_bytes"] = int(vmem_limit)

    loss_parts, cnt_parts = pl.pallas_call(
        kernel,
        out_shape=(jax.ShapeDtypeStruct((nr, 8, 128), jnp.float32),
                   jax.ShapeDtypeStruct((nr, 8, 128), jnp.float32)),
        grid_spec=pltpu.PrefetchScalarGridSpec(
            num_scalar_prefetch=0,
            grid=(nr, nc),
            in_specs=in_specs,
            out_specs=(pl.BlockSpec((1, 8, 128), lambda r, c: (r, 0, 0)),
                       pl.BlockSpec((1, 8, 128), lambda r, c: (r, 0, 0))),
            scratch_shapes=scratch),
        compiler_params=pltpu.CompilerParams(**cp),
    )(*args)

    total_loss = jnp.sum(loss_parts[:, 0, 0])
    total_pairs = jnp.sum(cnt_parts[:, 0, 0])
    mean_loss = total_loss / (total_pairs + 1e-8)
    if reduction == 'sum':
        return mean_loss * total_pairs
    return mean_loss


# --------------------------------------------------------------------------- #
# Pure-JAX reference (faithful to the PyTorch forward) for validation.        #
# --------------------------------------------------------------------------- #
def infonce_loss_ref(features, labels=None, *, temperature=0.07, reduction='mean',
                     chunk_size=256, matmul_dtype=jnp.float32):
    features = features.astype(jnp.float32)
    feats = features / jnp.maximum(
        jnp.linalg.norm(features, axis=1, keepdims=True), 1e-12)
    n = feats.shape[0]
    total_loss = jnp.float32(0.0)
    total_pairs = jnp.float32(0.0)
    for cs in range(0, n, chunk_size):
        ce = min(cs + chunk_size, n)
        cc = ce - cs
        cf = jnp.clip(feats[cs:ce], -1000.0, 1000.0).astype(matmul_dtype)
        ff = jnp.clip(feats, -1000.0, 1000.0).astype(matmul_dtype)
        sim = jnp.dot(cf, ff.T, preferred_element_type=jnp.float32)
        sim = sim / max(float(temperature), 1e-4)
        mask_self = jnp.ones((cc, n), bool).at[
            jnp.arange(cc), cs + jnp.arange(cc)].set(False)
        if labels is not None:
            mask_pos = (labels[cs:ce][:, None] == labels[None, :]) & mask_self
            mask_pos = jnp.where(jnp.any(mask_pos), mask_pos, mask_self)
        else:
            mask_pos = mask_self
        sim_max = sim.max(axis=1, keepdims=True)
        simc = jnp.clip(sim - sim_max, -1000.0, 1000.0)
        exp_sim = jnp.clip(jnp.exp(simc), 1e-8, None) * mask_self
        lse = jnp.log(exp_sim.sum(axis=1, keepdims=True) + 1e-8)
        log_prob = jnp.clip(simc - lse, -1000.0, None)
        pos_pairs = mask_pos.sum(axis=1).astype(jnp.float32)
        cl = -(mask_pos * log_prob).sum(axis=1)
        valid = pos_pairs > 0
        cl = jnp.where(valid, cl / jnp.maximum(pos_pairs, 1.0), 0.0)
        total_loss = total_loss + cl.sum()
        total_pairs = total_pairs + valid.sum()
    mean_loss = total_loss / (total_pairs + 1e-8)
    if reduction == 'sum':
        return mean_loss * total_pairs
    return mean_loss


def _check(name, got, ref_bf16, ref_f32):
    got, rb, rf = float(got), float(ref_bf16), float(ref_f32)
    assert abs(got - rb) <= 1e-2 * (1.0 + abs(rb)), (name, got, rb)
    assert abs(got - rf) <= 5e-2 * (1.0 + abs(rf)), (name, got, rf)


if __name__ == "__main__":
    key = jax.random.PRNGKey(0)

    # Case 1: unsupervised (labels=None), batch=16, dim=32, chunk_size=8.
    feats = jax.random.normal(key, (16, 32), dtype=jnp.float32)
    out1 = jax.block_until_ready(
        infonce_loss_pallas(feats, None, temperature=0.07,
                            reduction='mean', chunk_size=8))
    _check("unsupervised", out1,
           infonce_loss_ref(feats, None, temperature=0.07, reduction='mean',
                            chunk_size=8, matmul_dtype=jnp.bfloat16),
           infonce_loss_ref(feats, None, temperature=0.07, reduction='mean',
                            chunk_size=8, matmul_dtype=jnp.float32))

    # Case 2: supervised labels with repeats, 'sum' reduction.
    labels = jnp.array([0, 1, 2, 3] * 4, dtype=jnp.int32)
    out2 = jax.block_until_ready(
        infonce_loss_pallas(feats, labels, temperature=0.07,
                            reduction='sum', chunk_size=8))
    _check("supervised_sum", out2,
           infonce_loss_ref(feats, labels, temperature=0.07, reduction='sum',
                            chunk_size=8, matmul_dtype=jnp.bfloat16),
           infonce_loss_ref(feats, labels, temperature=0.07, reduction='sum',
                            chunk_size=8, matmul_dtype=jnp.float32))

    # Case 3: non-divisible tails on both grid axes: N=320, chunk_size=128.
    feats3 = jax.random.normal(jax.random.PRNGKey(1), (320, 32), dtype=jnp.float32)
    labels3 = (jnp.arange(320) % 7).astype(jnp.int32)
    out3 = jax.block_until_ready(
        infonce_loss_pallas(feats3, labels3, temperature=0.1,
                            reduction='mean', chunk_size=128))
    _check("tails", out3,
           infonce_loss_ref(feats3, labels3, temperature=0.1, reduction='mean',
                            chunk_size=128, matmul_dtype=jnp.bfloat16),
           infonce_loss_ref(feats3, labels3, temperature=0.1, reduction='mean',
                            chunk_size=128, matmul_dtype=jnp.float32))

    # Case 4: per-sub-chunk has_pos fallback — the first semantic chunk (rows
    # 0..7, unique labels) has no positives while the others do, and multiple
    # semantic chunks share one kernel row block.
    feats4 = jax.random.normal(jax.random.PRNGKey(2), (24, 32), dtype=jnp.float32)
    labels4 = jnp.concatenate([jnp.arange(100, 108),
                               jnp.arange(8), jnp.arange(8)]).astype(jnp.int32)
    out4 = jax.block_until_ready(
        infonce_loss_pallas(feats4, labels4, temperature=0.07,
                            reduction='mean', chunk_size=8))
    _check("subchunk_fallback", out4,
           infonce_loss_ref(feats4, labels4, temperature=0.07, reduction='mean',
                            chunk_size=8, matmul_dtype=jnp.bfloat16),
           infonce_loss_ref(feats4, labels4, temperature=0.07, reduction='mean',
                            chunk_size=8, matmul_dtype=jnp.float32))

    print("KERNEL_OK")
</pallas_src>

<mosaic_0001>
module attributes {stable_mosaic.version = 11 : i64} {
  func.func @_l2_normalize_kernel(%arg0: i32, %arg1: memref<128x128xf32, #tpu.memory_space<vmem>>, %arg2: memref<128x128xbf16, #tpu.memory_space<vmem>>) attributes {dimension_semantics = [#tpu.dimension_semantics<parallel>], iteration_bounds = array<i64: 1>, scalar_prefetch = 0 : i64, scratch_operands = 0 : i64, tpu.core_type = #tpu.core_type<tc>, window_params = [{transform_indices = @transform_0, window_bounds = array<i64: 128, 128>}, {transform_indices = @transform_1, window_bounds = array<i64: 128, 128>}]} {
    %c0 = arith.constant 0 : index
    %c0_0 = arith.constant 0 : index
    %0 = vector.load %arg1[%c0, %c0_0] : memref<128x128xf32, #tpu.memory_space<vmem>>, vector<128x128xf32>
    %1 = arith.mulf %0, %0 : vector<128x128xf32>
    %cst = arith.constant dense<0.000000e+00> : vector<128xf32>
    %2 = vector.multi_reduction <add>, %1, %cst [1] : vector<128x128xf32> to vector<128xf32>
    %3 = vector.shape_cast %2 : vector<128xf32> to vector<128x1xf32>
    %cst_1 = arith.constant 1.000000e-24 : f32
    %4 = vector.broadcast %cst_1 : f32 to vector<128x1xf32>
    %5 = arith.maximumf %3, %4 : vector<128x1xf32>
    %6 = math.rsqrt %5 : vector<128x1xf32>
    %7 = vector.broadcast %6 : vector<128x1xf32> to vector<128x128xf32>
    %8 = arith.mulf %0, %7 : vector<128x128xf32>
    %cst_2 = arith.constant -1.000000e+03 : f32
    %cst_3 = arith.constant 1.000000e+03 : f32
    %9 = vector.broadcast %cst_2 : f32 to vector<128x128xf32>
    %10 = arith.maximumf %9, %8 : vector<128x128xf32>
    %11 = vector.broadcast %cst_3 : f32 to vector<128x128xf32>
    %12 = arith.minimumf %11, %10 : vector<128x128xf32>
    %13 = arith.truncf %12 : vector<128x128xf32> to vector<128x128xbf16>
    %c0_4 = arith.constant 0 : index
    %c0_5 = arith.constant 0 : index
    %14 = vector.load %arg2[%c0_4, %c0_5] : memref<128x128xbf16, #tpu.memory_space<vmem>>, vector<128x128xbf16>
    tpu.vector_store %arg2[%c0_4, %c0_5], %13 {strides = array<i32>} : memref<128x128xbf16, #tpu.memory_space<vmem>>, vector<128x128xbf16>,
    return
  }
  func.func @transform_0(%arg0: i32) -> (i32, i32) {
    %c0_i32 = arith.constant 0 : i32
    %c0_i32_0 = arith.constant 0 : i32
    return %arg0, %c0_i32 : i32, i32
  }
  func.func @transform_1(%arg0: i32) -> (i32, i32) {
    %c0_i32 = arith.constant 0 : i32
    %c0_i32_0 = arith.constant 0 : i32
    return %arg0, %c0_i32 : i32, i32
  }
}

</mosaic_0001>

<bundles_post_ra>
// kernel: tpu_custom_call.1
= control target key start
LH: loop header
LB: loop body
LE: loop exit
PB: predicated region body
PF: predicated region fallthrough
CT: control target
= control target key end

     0   :  { %6 = vsyncpa [#allocation3], 0  ;;  %s543_s0 = inlined_call_operand.hbm [shape: f32[128,128], index: 0, kind: input, shape index: {}]   ;;  %s544_s1 = inlined_call_operand.hbm [shape: bf16[128,128], index: 1, kind: output, shape index: {}]  }
   0x1   :  { %7 = vsyncpa [#allocation4], 0  ;;  %s441_s6 = smov [#allocation2]  }
   0x2   :  { %s13_s7 = sshll.u32 %s441_s6, 4  ;;  %s14_s7 = int_to_ptr.vmem [resolvable:$true] %s13_s7 }
   0x3   :  { %s405_s8 = scalar_lea.vmem %s14_s7, 2048  ;;  %p410_p1 = scmp.lt.s32.totalorder %s14_s7, %s14_s7 }
   0x4   :  { %p406_p0 = scmp.ne.s32.totalorder %s14_s7, %s405_s8  ;;  %p411_p2 = scmp.lt.s32.totalorder %s405_s8, %s405_s8 }
   0x6   :  { %p412_p3 = por %p411_p2, %p410_p1 }
   0x8   :  { %p413_p4 = pnand %p412_p3, %p406_p0 }
   0xa   :  { %416 = shalt.err (!%p413_p4)
}
   0xb   :  { %s442_s9 = smov 128   ;;  %s443_s10 = smov 8  }
   0xc   :  { %19 = dma.hbm_to_vmem [thread:$0]  %s543_s0, 2048, %s14_s7, [#allocation3], %s442_s9, %s442_s9, %s443_s10  }
   0xd   :  { %437 = dma.done.wait [#allocation3], 2048  }
   0xe   :  { %438 = vsyncadd [#allocation3], 4294965248  ;;  %v460_v0 = vld [vmem:[#allocation2 + $0x10] sm:$0xff]  ;;  %v462_v1 = vld [vmem:[#allocation2] sm:$0xff]  ;;  %s444_s0 = smov [#allocation5]  }
   0xf   :  { %v464_v2 = vld [vmem:[#allocation2 + $0x18] sm:$0xff]  ;;  %v41_v3 = vmul.f32 %v460_v0, %v460_v0  ;;  %v39_v4 = vmul.f32 %v462_v1, %v462_v1  ;;  %v470_v5 = vld [vmem:[#allocation2 + $0x8] sm:$0xff]  ;;  %v478_v9 = vld [vmem:[#allocation2 + $0x20] sm:$0xff]  ;;  %s252_s13 = sshll.u32 %s444_s0, 4  ;;  %s253_s13 = int_to_ptr.vmem [resolvable:$true] %s252_s13 }
  0x10   :  { %v42_v6 = vmul.f32 %v464_v2, %v464_v2  ;;  %v40_v7 = vmul.f32 %v470_v5, %v470_v5  ;;  %v476_v8 = vld [vmem:[#allocation2 + $0x28] sm:$0xff]  ;;  %v43_v11 = vmul.f32 %v478_v9, %v478_v9  ;;  %v484_v12 = vld [vmem:[#allocation2 + $0x38] sm:$0xff]  ;;  %v486_v13 = vld [vmem:[#allocation2 + $0x30] sm:$0xff]  ;;  %s417_s14 = scalar_lea.vmem %s253_s13, 1024  ;;  %p422_p6 = scmp.lt.s32.totalorder %s253_s13, %s253_s13 }
  0x11   :  { %59 = vadd.xlane.f32.xlu1 %v41_v3  ;;  %55 = vadd.xlane.f32.xlu0 %v39_v4  ;;  %v44_v10 = vmul.f32 %v476_v8, %v476_v8  ;;  %v46_v14 = vmul.f32 %v484_v12, %v484_v12  ;;  %v45_v15 = vmul.f32 %v486_v13, %v486_v13  ;;  %v492_v16 = vld [vmem:[#allocation2 + $0x48] sm:$0xff]  ;;  %v494_v17 = vld [vmem:[#allocation2 + $0x40] sm:$0xff]  ;;  %v500_v20 = vld [vmem:[#allocation2 + $0x58] sm:$0xff]  ;;  %p418_p5 = scmp.ne.s32.totalorder %s253_s13, %s417_s14  ;;  %p423_p7 = scmp.lt.s32.totalorder %s417_s14, %s417_s14 }
  0x12   :  { %v48_v18 = vmul.f32 %v492_v16, %v492_v16  ;;  %v47_v19 = vmul.f32 %v494_v17, %v494_v17  ;;  %v502_v21 = vld [vmem:[#allocation2 + $0x50] sm:$0xff]  ;;  %v50_v22 = vmul.f32 %v500_v20, %v500_v20  ;;  %v508_v24 = vld [vmem:[#allocation2 + $0x68] sm:$0xff]  ;;  %v510_v25 = vld [vmem:[#allocation2 + $0x60] sm:$0xff] }
  0x13   :  { %v49_v23 = vmul.f32 %v502_v21, %v502_v21  ;;  %v52_v26 = vmul.f32 %v508_v24, %v508_v24  ;;  %v51_v27 = vmul.f32 %v510_v25, %v510_v25  ;;  %v516_v28 = vld [vmem:[#allocation2 + $0x78] sm:$0xff]  ;;  %v518_v29 = vld [vmem:[#allocation2 + $0x70] sm:$0xff]  ;;  %p424_p8 = por %p423_p7, %p422_p6 }
  0x14   :  { %v54_v30 = vmul.f32 %v516_v28, %v516_v28  ;;  %v53_v31 = vmul.f32 %v518_v29, %v518_v29 }
  0x15   :  { %61 = vadd.xlane.f32.xlu1 %v42_v6  ;;  %57 = vadd.xlane.f32.xlu0 %v40_v7  ;;  %p425_p9 = pnand %p424_p8, %p418_p5 }
  0x19   :  { %65 = vadd.xlane.f32.xlu1 %v44_v10  ;;  %63 = vadd.xlane.f32.xlu0 %v43_v11 }
  0x1d   :  { %69 = vadd.xlane.f32.xlu1 %v46_v14  ;;  %67 = vadd.xlane.f32.xlu0 %v45_v15 }
  0x21   :  { %73 = vadd.xlane.f32.xlu1 %v48_v18  ;;  %71 = vadd.xlane.f32.xlu0 %v47_v19 }
  0x25   :  { %77 = vadd.xlane.f32.xlu1 %v50_v22  ;;  %75 = vadd.xlane.f32.xlu0 %v49_v23 }
  0x29   :  { %81 = vadd.xlane.f32.xlu1 %v52_v26  ;;  %79 = vadd.xlane.f32.xlu0 %v51_v27 }
  0x2d   :  { %85 = vadd.xlane.f32.xlu1 %v54_v30  ;;  %83 = vadd.xlane.f32.xlu0 %v53_v31 }
  0x9a   :  { %v60_v32 = vpop.xlane.xlu1 %59  ;;  %v56_v33 = vpop.xlane.xlu0 %55 }
  0x9b   :  { %v89_v34 = vmax.f32 %v60_v32, 1e-24  ;;  %v87_v35 = vmax.f32 %v56_v33, 1e-24 }
  0x9d   :  { %365 = vrsqrt.f32 %v89_v34 }
  0x9e   :  { %367 = vrsqrt.f32 %v87_v35  ;;  %v62_v36 = vpop.xlane.xlu1 %61  ;;  %v58_v37 = vpop.xlane.xlu0 %57 }
  0x9f   :  { %v90_v38 = vmax.f32 %v62_v36, 1e-24  ;;  %v88_v39 = vmax.f32 %v58_v37, 1e-24 }
  0xa1   :  { %369 = vrsqrt.f32 %v90_v38 }
  0xa2   :  { %371 = vrsqrt.f32 %v88_v39  ;;  %v66_v40 = vpop.xlane.xlu1 %65  ;;  %v64_v41 = vpop.xlane.xlu0 %63 }
  0xa3   :  { %v92_v42 = vmax.f32 %v66_v40, 1e-24  ;;  %v91_v43 = vmax.f32 %v64_v41, 1e-24 }
  0xa5   :  { %373 = vrsqrt.f32 %v92_v42 }
  0xa6   :  { %375 = vrsqrt.f32 %v91_v43  ;;  %v70_v44 = vpop.xlane.xlu1 %69  ;;  %v68_v45 = vpop.xlane.xlu0 %67 }
  0xa7   :  { %v94_v46 = vmax.f32 %v70_v44, 1e-24  ;;  %v93_v47 = vmax.f32 %v68_v45, 1e-24 }
  0xa9   :  { %377 = vrsqrt.f32 %v94_v46 }
  0xaa   :  { %v366_v48 = vpop.eup %365  ;;  %379 = vrsqrt.f32 %v93_v47  ;;  %v74_v49 = vpop.xlane.xlu1 %73 }
  0xab   :  { %v72_v50 = vpop.xlane.xlu0 %71  ;;  %v368_v51 = vpop.eup %367  ;;  %v96_v52 = vmax.f32 %v74_v49, 1e-24  ;;  %v121_v54 = vmul.f32 %v366_v48, %v460_v0 }
  0xac   :  { %v95_v53 = vmax.f32 %v72_v50, 1e-24  ;;  %v119_v56 = vmul.f32 %v368_v51, %v462_v1 }
  0xad   :  { %381 = vrsqrt.f32 %v96_v52  ;;  %v266_v3 = vclamps-f32 %v121_v54, 1000.0 }
  0xae   :  { %v370_v55 = vpop.eup %369  ;;  %383 = vrsqrt.f32 %v95_v53  ;;  %v78_v57 = vpop.xlane.xlu1 %77  ;;  %v264_v7 = vclamps-f32 %v119_v56, 1000.0 }
  0xaf   :  { %v76_v58 = vpop.xlane.xlu0 %75  ;;  %v372_v59 = vpop.eup %371  ;;  %v122_v60 = vmul.f32 %v370_v55, %v464_v2  ;;  %v98_v61 = vmax.f32 %v78_v57, 1e-24 }
  0xb0   :  { %v97_v62 = vmax.f32 %v76_v58, 1e-24  ;;  %v120_v63 = vmul.f32 %v372_v59, %v470_v5 }
  0xb1   :  { %v267_v4 = vclamps-f32 %v122_v60, 1000.0  ;;  %385 = vrsqrt.f32 %v98_v61 }
  0xb2   :  { %v374_v6 = vpop.eup %373  ;;  %v265_v0 = vclamps-f32 %v120_v63, 1000.0  ;;  %387 = vrsqrt.f32 %v97_v62  ;;  %v82_v10 = vpop.xlane.xlu1 %81 }
  0xb3   :  { %v80_v11 = vpop.xlane.xlu0 %79  ;;  %v376_v1 = vpop.eup %375  ;;  %v320_v14 = vpack.c.bf16 %v267_v4, %v266_v3  ;;  %v124_v15 = vmul.f32 %v374_v6, %v476_v8  ;;  %v100_v18 = vmax.f32 %v82_v10, 1e-24 }
  0xb4   :  { %v99_v19 = vmax.f32 %v80_v11, 1e-24  ;;  %v315_v2 = vpack.c.bf16 %v265_v0, %v264_v7  ;;  %v123_v22 = vmul.f32 %v376_v1, %v478_v9 }
  0xb5   :  { %352 = vst [vmem:[#allocation5 + $0x8] sm:$0xff] %v320_v14   ;;  %v269_v5 = vclamps-f32 %v124_v15, 1000.0  ;;  %389 = vrsqrt.f32 %v100_v18 }
  0xb6   :  { %v378_v23 = vpop.eup %377  ;;  %316 = vst [vmem:[#allocation5] sm:$0xff] %v315_v2   ;;  %v268_v26 = vclamps-f32 %v123_v22, 1000.0  ;;  %391 = vrsqrt.f32 %v99_v19  ;;  %v86_v27 = vpop.xlane.xlu1 %85 }
  0xb7   :  { %v84_v30 = vpop.xlane.xlu0 %83  ;;  %v380_v31 = vpop.eup %379  ;;  %v126_v32 = vmul.f32 %v378_v23, %v484_v12  ;;  %v102_v33 = vmax.f32 %v86_v27, 1e-24 }
  0xb8   :  { %v101_v34 = vmax.f32 %v84_v30, 1e-24  ;;  %v325_v8 = vpack.c.bf16 %v269_v5, %v268_v26  ;;  %v125_v35 = vmul.f32 %v380_v31, %v486_v13 }
  0xb9   :  { %v271_v36 = vclamps-f32 %v126_v32, 1000.0  ;;  %393 = vrsqrt.f32 %v102_v33 }
  0xba   :  { %v382_v9 = vpop.eup %381  ;;  %353 = vst [vmem:[#allocation5 + $0x10] sm:$0xff] %v325_v8   ;;  %v270_v37 = vclamps-f32 %v125_v35, 1000.0  ;;  %395 = vrsqrt.f32 %v101_v34 }
  0xbb   :  { %v384_v38 = vpop.eup %383  ;;  %v128_v39 = vmul.f32 %v382_v9, %v492_v16 }
  0xbc   :  { %v330_v40 = vpack.c.bf16 %v271_v36, %v270_v37  ;;  %v127_v41 = vmul.f32 %v384_v38, %v494_v17 }
  0xbd   :  { %v273_v42 = vclamps-f32 %v128_v39, 1000.0 }
  0xbe   :  { %v386_v43 = vpop.eup %385  ;;  %354 = vst [vmem:[#allocation5 + $0x18] sm:$0xff] %v330_v40   ;;  %v272_v12 = vclamps-f32 %v127_v41, 1000.0 }
  0xbf   :  { %v388_v44 = vpop.eup %387  ;;  %v130_v45 = vmul.f32 %v386_v43, %v500_v20 }
  0xc0   :  { %v335_v13 = vpack.c.bf16 %v273_v42, %v272_v12  ;;  %v129_v46 = vmul.f32 %v388_v44, %v502_v21 }
  0xc1   :  { %v275_v47 = vclamps-f32 %v130_v45, 1000.0 }
  0xc2   :  { %v390_v48 = vpop.eup %389  ;;  %355 = vst [vmem:[#allocation5 + $0x20] sm:$0xff] %v335_v13   ;;  %v274_v49 = vclamps-f32 %v129_v46, 1000.0 }
  0xc3   :  { %v392_v50 = vpop.eup %391  ;;  %v132_v16 = vmul.f32 %v390_v48, %v508_v24 }
  0xc4   :  { %v340_v51 = vpack.c.bf16 %v275_v47, %v274_v49  ;;  %v131_v17 = vmul.f32 %v392_v50, %v510_v25 }
  0xc5   :  { %v277_v52 = vclamps-f32 %v132_v16, 1000.0 }
  0xc6   :  { %v394_v53 = vpop.eup %393  ;;  %356 = vst [vmem:[#allocation5 + $0x28] sm:$0xff] %v340_v51   ;;  %v276_v54 = vclamps-f32 %v131_v17, 1000.0 }
  0xc7   :  { %v396_v55 = vpop.eup %395  ;;  %v134_v20 = vmul.f32 %v394_v53, %v516_v28 }
  0xc8   :  { %v345_v56 = vpack.c.bf16 %v277_v52, %v276_v54  ;;  %v133_v21 = vmul.f32 %v396_v55, %v518_v29 }
  0xc9   :  { %v279_v57 = vclamps-f32 %v134_v20, 1000.0 }
  0xca   :  { %357 = vst [vmem:[#allocation5 + $0x30] sm:$0xff] %v345_v56   ;;  %v278_v58 = vclamps-f32 %v133_v21, 1000.0 }
  0xcc   :  { %v350_v24 = vpack.c.bf16 %v279_v57, %v278_v58 }
  0xce   :  { %358 = vst [vmem:[#allocation5 + $0x38] sm:$0xff] %v350_v24  }
  0xcf   :  { %428 = shalt.err (!%p425_p9)
}
  0xd0   :  { %s445_s15 = smov 64   ;;  %s446_s16 = smov 4  }
  0xd1   :  { %258 = dma.vmem_to_hbm [thread:$0]  %s253_s13, 1024, %s544_s1, [#allocation4], %s445_s15, %s445_s15, %s446_s16  }
  0xd2   :  { %439 = dma.done.wait [#allocation4], 1024  }
  0xd3   :  { %440 = vsyncadd [#allocation4], 4294966272 }
  0xd4   :  { %262 = vsyncpa [#allocation3], 1 }
  0xd5   :  { %263 = vsyncpa [#allocation4], 1 }

</bundles_post_ra>
